<compile_context>
chip_gen: v5e
topology: v5e:2x2
jax: 0.10.0
libtpu: 0.0.40
codegen_flags: <defaults>
</compile_context>

<pallas_src>
import functools

import jax
import jax.numpy as jnp
from jax.experimental import pallas as pl
from jax.experimental.pallas import tpu as pltpu


FP = 128             # lane-dense padded feature width (one full lane span)
LEAKY_SLOPE = 0.02   # matches F.leaky_relu(ne, 0.02) in the reference module


# ----------------------------------------------------------------------------
# Fused Pallas kernel: GCN stack + concat + edge-endpoint aggregation (1 sample)
# ----------------------------------------------------------------------------
def _gnn_fused_kernel(a_ref, x_ref, w_ref, b_ref, s_ref, o_ref):
    """a_ref: (1, N, N)   bf16 normalized dense adjacency A_hat (this sample)
       x_ref: (1, N, FP)  bf16 node features, zero-padded to FP lanes
       w_ref: (L, FP, FP) bf16 column-packed layer weights (VMEM, invariant)
       b_ref: (L, 1, FP)  f32  column-packed layer biases  (VMEM, invariant)
       s_ref: (E, N)      bf16 edge-endpoint incidence     (VMEM, invariant)
       o_ref: (1, E, FP)  f32  packed edge-output slab (valid cols [0, sum(fout)))"""
    a = a_ref[0]
    s = s_ref[...]
    h = x_ref[0]
    num_layers = w_ref.shape[0]

    # Packed node embeddings: each layer's activated output occupies a disjoint
    # packed column range (by construction of w/b), so a plain add reproduces
    # torch.cat([h0, h1, h2], dim=-1) with zero lane shuffles.
    h_acc = jnp.zeros(h.shape, jnp.float32)
    for l in range(num_layers):                       # static unroll over layers
        xw = jnp.dot(h, w_ref[l], preferred_element_type=jnp.float32)
        z = jnp.dot(a, xw.astype(jnp.bfloat16),
                    preferred_element_type=jnp.float32) + b_ref[l]
        h_f32 = jnp.maximum(z, LEAKY_SLOPE * z)       # leaky_relu(0.02), f32 VPU
        h_acc = h_acc + h_f32                         # disjoint packed columns
        h = h_f32.astype(jnp.bfloat16)                # feeds next layer (bf16 MXU)

    # Single fused edge-endpoint aggregation over ALL layers + one lane-dense
    # 128-wide HBM store.
    o_ref[0, :, :] = jnp.dot(s, h_acc.astype(jnp.bfloat16),
                             preferred_element_type=jnp.float32)


def gnn_fused(a_batched, x_pad, w_stack, b_stack, s):
    B, N, _ = x_pad.shape
    L = w_stack.shape[0]
    E = s.shape[0]
    flops = B * (L * (2 * N * FP * FP + 2 * N * N * FP) + 2 * E * N * FP)
    bytes_accessed = (B * N * N * 2 + B * N * FP * 2 + L * FP * FP * 2
                      + L * FP * 4 + E * N * 2 + B * E * FP * 4)
    return pl.pallas_call(
        _gnn_fused_kernel,
        out_shape=jax.ShapeDtypeStruct((B, E, FP), jnp.float32),
        grid=(B,),
        in_specs=[
            pl.BlockSpec((1, N, N), lambda i: (i, 0, 0)),
            pl.BlockSpec((1, N, FP), lambda i: (i, 0, 0)),
            # Grid-invariant operands: whole-array VMEM residency, no
            # per-step double-buffering / re-DMA.
            pl.BlockSpec(memory_space=pltpu.MemorySpace.VMEM),   # weights
            pl.BlockSpec(memory_space=pltpu.MemorySpace.VMEM),   # biases
            pl.BlockSpec(memory_space=pltpu.MemorySpace.VMEM),   # incidence
        ],
        out_specs=pl.BlockSpec((1, E, FP), lambda i: (i, 0, 0)),
        compiler_params=pltpu.CompilerParams(
            dimension_semantics=("parallel",),   # batch axis -> both TCs on v7x
        ),
        cost_estimate=pl.CostEstimate(
            flops=flops, transcendentals=0, bytes_accessed=bytes_accessed),
    )(a_batched, x_pad, w_stack, b_stack, s)


# ----------------------------------------------------------------------------
# Plain-JAX glue: PyG GCNConv gcn_norm (add_self_loops=True) as dense A_hat
# ----------------------------------------------------------------------------
def build_normalized_adjacency(edge_index, edge_weight, num_nodes):
    """Dense A_hat[i, j] = sum over edges (j -> i) of
       deg^{-1/2}[j] * w * deg^{-1/2}[i], with self-loops of weight 1."""
    row = edge_index[0]
    col = edge_index[1]
    loop = jnp.arange(num_nodes, dtype=edge_index.dtype)
    row_f = jnp.concatenate([row, loop])
    col_f = jnp.concatenate([col, loop])
    w_f = jnp.concatenate([edge_weight, jnp.ones((num_nodes,), jnp.float32)])

    deg = jnp.zeros((num_nodes,), jnp.float32).at[col_f].add(w_f)
    dinv = jnp.where(deg > 0, 1.0 / jnp.sqrt(deg), 0.0)
    norm = dinv[row_f] * w_f * dinv[col_f]

    a = jnp.zeros((num_nodes, num_nodes), jnp.float32).at[col_f, row_f].add(norm)
    return a


# ----------------------------------------------------------------------------
# Params
# ----------------------------------------------------------------------------
def init_gnn_params(key, num_features, num_gnn_layers):
    dims = []
    for i in range(num_gnn_layers):
        if i == 0:
            dims.append((num_features, num_features + 1))
        elif i == 1:
            dims.append((num_features + 1, num_features + 2))
        else:
            dims.append((num_features + 2, num_features + 2))
    params = []
    for (fin, fout) in dims:
        key, kw = jax.random.split(key)
        scale = jnp.sqrt(6.0 / (fin + fout))  # glorot-uniform style
        w = jax.random.uniform(kw, (fin, fout), jnp.float32, -scale, scale)
        b = jnp.zeros((fout,), jnp.float32)
        params.append((w, b))
    return params


def pack_params(params):
    """Column-pack layer weights/biases into (FP, FP)/(1, FP) slabs.

    Layer l reads its input at packed columns [in_off, in_off+fin) (where the
    previous layer wrote) and writes its valid output at packed columns
    [out_off, out_off+fout); successive layers' output ranges are disjoint, so
    summing the per-layer activations reproduces torch.cat(...) at columns
    [0, total_width).  Zero-padding is exact: padded output columns are
    leaky_relu(0) = 0 and zero rows of the next layer's weight ignore them."""
    L = len(params)
    ws = jnp.zeros((L, FP, FP), jnp.float32)
    bs = jnp.zeros((L, 1, FP), jnp.float32)
    in_off, out_off = 0, 0
    for l, (w, b) in enumerate(params):
        fin, fout = w.shape
        ws = ws.at[l, in_off:in_off + fin, out_off:out_off + fout].set(w)
        bs = bs.at[l, 0, out_off:out_off + fout].set(b)
        in_off = out_off
        out_off = out_off + fout
    total_width = out_off
    assert total_width <= FP, "packed embedding width must fit one lane span"
    return ws.astype(jnp.bfloat16), bs, total_width


# ----------------------------------------------------------------------------
# GNN forward
# ----------------------------------------------------------------------------
def gnn_forward(params, node_features, edge_index, capacities):
    """node_features: (B, N, F) f32, edge_index: (2, E) i32, capacities: (B, E) f32."""
    B, N, F = node_features.shape
    E = edge_index.shape[1]

    # Per-sample normalized dense adjacency (capacities are the edge weights).
    a_batched = jax.vmap(
        lambda caps: build_normalized_adjacency(edge_index, caps, N)
    )(capacities).astype(jnp.bfloat16)

    # Edge-endpoint incidence matrix (+1 at src column, +1 at dst column; a
    # self-loop edge gets 2, matching h[src] + h[dst] when src == dst).
    src, dst = edge_index[0], edge_index[1]
    s = (
        jnp.zeros((E, N), jnp.float32)
        .at[jnp.arange(E), src].add(1.0)
        .at[jnp.arange(E), dst].add(1.0)
    ).astype(jnp.bfloat16)

    # Lane-dense zero-padding + bf16 cast of MXU operands (f32 accumulation and
    # f32 bias/leaky_relu are kept inside the kernel).
    x_pad = jnp.pad(node_features, ((0, 0), (0, 0), (0, FP - F))).astype(jnp.bfloat16)
    w_stack, b_stack, total_width = pack_params(params)

    # One fused Pallas call: all GCN layers + concat + edge-endpoint sum.
    out_pad = gnn_fused(a_batched, x_pad, w_stack, b_stack, s)   # (B, E, FP)

    # Valid packed columns == torch.cat(per-layer embeddings); append capacity.
    return jnp.concatenate(
        [out_pad[..., :total_width], capacities[..., None]], axis=-1)


# ----------------------------------------------------------------------------
# Main
# ----------------------------------------------------------------------------
if __name__ == "__main__":
    num_features = 6
    num_gnn_layers = 3
    batch_size = 2
    num_nodes = 8
    num_edges = 12

    key = jax.random.PRNGKey(0)
    kp, kx, ke, kc = jax.random.split(key, 4)

    params = init_gnn_params(kp, num_features, num_gnn_layers)

    node_features = jax.random.normal(
        kx, (batch_size, num_nodes, num_features), jnp.float32
    )
    edge_index = jax.random.randint(
        ke, (2, num_edges), 0, num_nodes, dtype=jnp.int32
    )
    capacities = jax.random.uniform(
        kc, (batch_size, num_edges), jnp.float32, 0.1, 1.0
    )

    fwd = jax.jit(functools.partial(gnn_forward, params))
    out = fwd(node_features, edge_index, capacities)
    jax.block_until_ready(out)

    expected_dim = num_gnn_layers * (num_features + 2) - 1 + 1  # +1 for capacity
    assert out.shape == (batch_size, num_edges, expected_dim), out.shape
    print("KERNEL_OK")
</pallas_src>

<mosaic_0001>
module attributes {stable_mosaic.version = 11 : i64} {
  func.func @_gnn_fused_kernel(%arg0: i32, %arg1: memref<1x8x8xbf16, #tpu.memory_space<vmem>>, %arg2: memref<1x8x128xbf16, #tpu.memory_space<vmem>>, %arg3: memref<3x128x128xbf16, #tpu.memory_space<vmem>>, %arg4: memref<3x1x128xf32, #tpu.memory_space<vmem>>, %arg5: memref<12x8xbf16, #tpu.memory_space<vmem>>, %arg6: memref<1x12x128xf32, #tpu.memory_space<vmem>>) attributes {dimension_semantics = [#tpu.dimension_semantics<parallel>], iteration_bounds = array<i64: 2>, scalar_prefetch = 0 : i64, scratch_operands = 0 : i64, tpu.core_type = #tpu.core_type<tc>, window_params = [{transform_indices = @transform_0, window_bounds = array<i64: 1, 8, 8>}, {transform_indices = @transform_1, window_bounds = array<i64: 1, 8, 128>}, {pipeline_mode = #tpu.pipeline_mode<synchronous>, transform_indices = @transform_2, window_bounds = array<i64: 3, 128, 128>}, {pipeline_mode = #tpu.pipeline_mode<synchronous>, transform_indices = @transform_3, window_bounds = array<i64: 3, 1, 128>}, {pipeline_mode = #tpu.pipeline_mode<synchronous>, transform_indices = @transform_4, window_bounds = array<i64: 12, 8>}, {transform_indices = @transform_5, window_bounds = array<i64: 1, 12, 128>}]} {
    %c0 = arith.constant 0 : index
    %c0_0 = arith.constant 0 : index
    %c0_1 = arith.constant 0 : index
    %0 = vector.load %arg1[%c0, %c0_0, %c0_1] : memref<1x8x8xbf16, #tpu.memory_space<vmem>>, vector<1x8x8xbf16>
    %1 = vector.shape_cast %0 : vector<1x8x8xbf16> to vector<8x8xbf16>
    %c0_2 = arith.constant 0 : index
    %c0_3 = arith.constant 0 : index
    %2 = vector.load %arg5[%c0_2, %c0_3] : memref<12x8xbf16, #tpu.memory_space<vmem>>, vector<12x8xbf16>
    %c0_4 = arith.constant 0 : index
    %c0_5 = arith.constant 0 : index
    %c0_6 = arith.constant 0 : index
    %3 = vector.load %arg2[%c0_4, %c0_5, %c0_6] : memref<1x8x128xbf16, #tpu.memory_space<vmem>>, vector<1x8x128xbf16>
    %4 = vector.shape_cast %3 : vector<1x8x128xbf16> to vector<8x128xbf16>
    %cst = arith.constant 0.000000e+00 : f32
    %5 = vector.broadcast %cst : f32 to vector<8x128xf32>
    %c0_7 = arith.constant 0 : index
    %c0_8 = arith.constant 0 : index
    %c0_9 = arith.constant 0 : index
    %6 = vector.load %arg3[%c0_7, %c0_8, %c0_9] : memref<3x128x128xbf16, #tpu.memory_space<vmem>>, vector<1x128x128xbf16>
    %7 = vector.shape_cast %6 : vector<1x128x128xbf16> to vector<128x128xbf16>
    %cst_10 = arith.constant dense<0.000000e+00> : vector<8x128xf32>
    %8 = tpu.matmul %4, %7, %cst_10 {dimension_numbers = #tpu.dot_dimension_numbers<[1], [0], [0], [1], [0, 0, 1, 1], [], []>} : vector<8x128xbf16>, vector<128x128xbf16>, vector<8x128xf32> -> vector<8x128xf32>
    %9 = arith.truncf %8 : vector<8x128xf32> to vector<8x128xbf16>
    %cst_11 = arith.constant dense<0.000000e+00> : vector<8x128xf32>
    %10 = tpu.matmul %1, %9, %cst_11 {dimension_numbers = #tpu.dot_dimension_numbers<[1], [0], [0], [1], [0, 0, 1, 1], [], []>} : vector<8x8xbf16>, vector<8x128xbf16>, vector<8x128xf32> -> vector<8x128xf32>
    %c0_12 = arith.constant 0 : index
    %c0_13 = arith.constant 0 : index
    %c0_14 = arith.constant 0 : index
    %11 = vector.load %arg4[%c0_12, %c0_13, %c0_14] : memref<3x1x128xf32, #tpu.memory_space<vmem>>, vector<1x1x128xf32>
    %12 = vector.shape_cast %11 : vector<1x1x128xf32> to vector<1x128xf32>
    %13 = vector.broadcast %12 : vector<1x128xf32> to vector<8x128xf32>
    %14 = arith.addf %10, %13 : vector<8x128xf32>
    %cst_15 = arith.constant 2.000000e-02 : f32
    %15 = vector.broadcast %cst_15 : f32 to vector<8x128xf32>
    %16 = arith.mulf %15, %14 : vector<8x128xf32>
    %17 = arith.maximumf %14, %16 : vector<8x128xf32>
    %18 = arith.addf %5, %17 : vector<8x128xf32>
    %19 = arith.truncf %17 : vector<8x128xf32> to vector<8x128xbf16>
    %c1 = arith.constant 1 : index
    %c0_16 = arith.constant 0 : index
    %c0_17 = arith.constant 0 : index
    %20 = vector.load %arg3[%c1, %c0_16, %c0_17] : memref<3x128x128xbf16, #tpu.memory_space<vmem>>, vector<1x128x128xbf16>
    %21 = vector.shape_cast %20 : vector<1x128x128xbf16> to vector<128x128xbf16>
    %cst_18 = arith.constant dense<0.000000e+00> : vector<8x128xf32>
    %22 = tpu.matmul %19, %21, %cst_18 {dimension_numbers = #tpu.dot_dimension_numbers<[1], [0], [0], [1], [0, 0, 1, 1], [], []>} : vector<8x128xbf16>, vector<128x128xbf16>, vector<8x128xf32> -> vector<8x128xf32>
    %23 = arith.truncf %22 : vector<8x128xf32> to vector<8x128xbf16>
    %cst_19 = arith.constant dense<0.000000e+00> : vector<8x128xf32>
    %24 = tpu.matmul %1, %23, %cst_19 {dimension_numbers = #tpu.dot_dimension_numbers<[1], [0], [0], [1], [0, 0, 1, 1], [], []>} : vector<8x8xbf16>, vector<8x128xbf16>, vector<8x128xf32> -> vector<8x128xf32>
    %c1_20 = arith.constant 1 : index
    %c0_21 = arith.constant 0 : index
    %c0_22 = arith.constant 0 : index
    %25 = vector.load %arg4[%c1_20, %c0_21, %c0_22] : memref<3x1x128xf32, #tpu.memory_space<vmem>>, vector<1x1x128xf32>
    %26 = vector.shape_cast %25 : vector<1x1x128xf32> to vector<1x128xf32>
    %27 = vector.broadcast %26 : vector<1x128xf32> to vector<8x128xf32>
    %28 = arith.addf %24, %27 : vector<8x128xf32>
    %cst_23 = arith.constant 2.000000e-02 : f32
    %29 = vector.broadcast %cst_23 : f32 to vector<8x128xf32>
    %30 = arith.mulf %29, %28 : vector<8x128xf32>
    %31 = arith.maximumf %28, %30 : vector<8x128xf32>
    %32 = arith.addf %18, %31 : vector<8x128xf32>
    %33 = arith.truncf %31 : vector<8x128xf32> to vector<8x128xbf16>
    %c2 = arith.constant 2 : index
    %c0_24 = arith.constant 0 : index
    %c0_25 = arith.constant 0 : index
    %34 = vector.load %arg3[%c2, %c0_24, %c0_25] : memref<3x128x128xbf16, #tpu.memory_space<vmem>>, vector<1x128x128xbf16>
    %35 = vector.shape_cast %34 : vector<1x128x128xbf16> to vector<128x128xbf16>
    %cst_26 = arith.constant dense<0.000000e+00> : vector<8x128xf32>
    %36 = tpu.matmul %33, %35, %cst_26 {dimension_numbers = #tpu.dot_dimension_numbers<[1], [0], [0], [1], [0, 0, 1, 1], [], []>} : vector<8x128xbf16>, vector<128x128xbf16>, vector<8x128xf32> -> vector<8x128xf32>
    %37 = arith.truncf %36 : vector<8x128xf32> to vector<8x128xbf16>
    %cst_27 = arith.constant dense<0.000000e+00> : vector<8x128xf32>
    %38 = tpu.matmul %1, %37, %cst_27 {dimension_numbers = #tpu.dot_dimension_numbers<[1], [0], [0], [1], [0, 0, 1, 1], [], []>} : vector<8x8xbf16>, vector<8x128xbf16>, vector<8x128xf32> -> vector<8x128xf32>
    %c2_28 = arith.constant 2 : index
    %c0_29 = arith.constant 0 : index
    %c0_30 = arith.constant 0 : index
    %39 = vector.load %arg4[%c2_28, %c0_29, %c0_30] : memref<3x1x128xf32, #tpu.memory_space<vmem>>, vector<1x1x128xf32>
    %40 = vector.shape_cast %39 : vector<1x1x128xf32> to vector<1x128xf32>
    %41 = vector.broadcast %40 : vector<1x128xf32> to vector<8x128xf32>
    %42 = arith.addf %38, %41 : vector<8x128xf32>
    %cst_31 = arith.constant 2.000000e-02 : f32
    %43 = vector.broadcast %cst_31 : f32 to vector<8x128xf32>
    %44 = arith.mulf %43, %42 : vector<8x128xf32>
    %45 = arith.maximumf %42, %44 : vector<8x128xf32>
    %46 = arith.addf %32, %45 : vector<8x128xf32>
    %47 = arith.truncf %46 : vector<8x128xf32> to vector<8x128xbf16>
    %cst_32 = arith.constant dense<0.000000e+00> : vector<12x128xf32>
    %48 = tpu.matmul %2, %47, %cst_32 {dimension_numbers = #tpu.dot_dimension_numbers<[1], [0], [0], [1], [0, 0, 1, 1], [], []>} : vector<12x8xbf16>, vector<8x128xbf16>, vector<12x128xf32> -> vector<12x128xf32>
    %c0_33 = arith.constant 0 : index
    %c0_34 = arith.constant 0 : index
    %c0_35 = arith.constant 0 : index
    %49 = vector.load %arg6[%c0_33, %c0_34, %c0_35] : memref<1x12x128xf32, #tpu.memory_space<vmem>>, vector<1x12x128xf32>
    %50 = vector.shape_cast %49 : vector<1x12x128xf32> to vector<12x128xf32>
    %51 = vector.shape_cast %48 : vector<12x128xf32> to vector<1x12x128xf32>
    tpu.vector_store %arg6[%c0_33, %c0_34, %c0_35], %51 {strides = array<i32>} : memref<1x12x128xf32, #tpu.memory_space<vmem>>, vector<1x12x128xf32>,
    return
  }
  func.func @transform_0(%arg0: i32) -> (i32, i32, i32) {
    %c0_i32 = arith.constant 0 : i32
    %c0_i32_0 = arith.constant 0 : i32
    %c0_i32_1 = arith.constant 0 : i32
    return %arg0, %c0_i32, %c0_i32_0 : i32, i32, i32
  }
  func.func @transform_1(%arg0: i32) -> (i32, i32, i32) {
    %c0_i32 = arith.constant 0 : i32
    %c0_i32_0 = arith.constant 0 : i32
    %c0_i32_1 = arith.constant 0 : i32
    return %arg0, %c0_i32, %c0_i32_0 : i32, i32, i32
  }
  func.func @transform_2(%arg0: i32) -> (i32, i32, i32) {
    %c0_i32 = arith.constant 0 : i32
    %c0_i32_0 = arith.constant 0 : i32
    %c0_i32_1 = arith.constant 0 : i32
    %c0_i32_2 = arith.constant 0 : i32
    return %c0_i32, %c0_i32_0, %c0_i32_1 : i32, i32, i32
  }
  func.func @transform_3(%arg0: i32) -> (i32, i32, i32) {
    %c0_i32 = arith.constant 0 : i32
    %c0_i32_0 = arith.constant 0 : i32
    %c0_i32_1 = arith.constant 0 : i32
    %c0_i32_2 = arith.constant 0 : i32
    return %c0_i32, %c0_i32_0, %c0_i32_1 : i32, i32, i32
  }
  func.func @transform_4(%arg0: i32) -> (i32, i32) {
    %c0_i32 = arith.constant 0 : i32
    %c0_i32_0 = arith.constant 0 : i32
    %c0_i32_1 = arith.constant 0 : i32
    return %c0_i32, %c0_i32_0 : i32, i32
  }
  func.func @transform_5(%arg0: i32) -> (i32, i32, i32) {
    %c0_i32 = arith.constant 0 : i32
    %c0_i32_0 = arith.constant 0 : i32
    %c0_i32_1 = arith.constant 0 : i32
    return %arg0, %c0_i32, %c0_i32_0 : i32, i32, i32
  }
}

</mosaic_0001>

<bundles_post_ra>
// kernel: gnn_forward.1
= control target key start
LH: loop header
LB: loop body
LE: loop exit
PB: predicated region body
PF: predicated region fallthrough
CT: control target
= control target key end

     0   :  { %s877_s18 = smov 0   ;;  %s996_s0 = inlined_call_operand.vmem [shape: bf16[2,8,8], index: 0, kind: input, shape index: {}]   ;;  %s997_s1 = inlined_call_operand.vmem [shape: bf16[2,8,128], index: 1, kind: input, shape index: {}]   ;;  %s998_s2 = inlined_call_operand.vmem [shape: bf16[3,128,128], index: 2, kind: input, shape index: {}]   ;;  %s999_s3 = inlined_call_operand.vmem [shape: f32[3,1,128], index: 3, kind: input, shape index: {}]   ;;  %s1000_s4 = inlined_call_operand.vmem [shape: bf16[12,8], index: 4, kind: input, shape index: {}]   ;;  %s1001_s5 = inlined_call_operand.vmem [shape: f32[2,12,128], index: 5, kind: output, shape index: {}]  }
   0x1 LB: > { %s653_s19 = sadd.s32 4294967295, %s845_s18   ;;  %p657_p0 = scmp.ge.s32.totalorder %s845_s18, 1  ;;  %s845_s18 = sphi %s877_s18, %s15_s18  }
   0x2   : > { %p195_p1 = scmp.lt.s32.totalorder %s845_s18, 3 }
   0x4   : > { %p196_p2 = pnand %p657_p0, %p195_p1 }
   0x5   : > { %p226_p3 = scmp.lt.s32.totalorder (!%p196_p2), %s653_s19, 1 }
   0x6   : > { %199 = sbr.rel (%p196_p2) target bundleno = 1006 (0x3ee), region = 40 }
   0xb   : > { %v811_v0 = vld [vmem:[%s998_s2 + $0x38] sm:$0xff]  ;;  %v810_v1 = vld [vmem:[%s998_s2 + $0x30] sm:$0xff]  ;;  %v809_v2 = vld [vmem:[%s998_s2 + $0x28] sm:$0xff]  ;;  %s1003_s19 = smov (!%p226_p3, %s653_s19), 1  ;;  %vm330_vm0 = vcmask 1043456   ;;  %vm326_vm1 = vcmask 64512  }
   0xc   : > { %308 = vmatpush.bf16.msra.mxu0 %v811_v0  ;;  %v808_v3 = vld [vmem:[%s998_s2 + $0x20] sm:$0xff]  ;;  %v807_v4 = vld [vmem:[%s998_s2 + $0x18] sm:$0xff]  ;;  %v806_v5 = vld [vmem:[%s998_s2 + $0x10] sm:$0xff]  ;;  %s658_s9 = sshll.u32 %s1003_s19, 2 }
   0xd   : > { %v805_v6 = vld [vmem:[%s998_s2 + $0x8] sm:$0xff]  ;;  %v804_v7 = vld [vmem:[%s998_s2] sm:$0xff]  ;;  %s233_s14 = scalar_lea.vmem %s997_s1, %s658_s9  ;;  %v819_v9 = vld [vmem:[%s998_s2 + $0x78] sm:$0xff]  ;;  %s229_s6 = scalar_lea.vmem %s996_s0, %s658_s9 }
   0xe   : > { %v243_v8 = vld [vmem:[%s233_s14] sm:$0xf]  ;;  %416 = vmatpush.bf16.msra.mxu2 %v819_v9  ;;  %v818_v10 = vld [vmem:[%s998_s2 + $0x70] sm:$0xff]  ;;  %v817_v11 = vld [vmem:[%s998_s2 + $0x68] sm:$0xff]  ;;  %s802_s14 = sshll.u32 %s1003_s19, 4 }
   0xf   : > { %v816_v12 = vld [vmem:[%s998_s2 + $0x60] sm:$0xff]  ;;  %v815_v13 = vld [vmem:[%s998_s2 + $0x58] sm:$0xff]  ;;  %v814_v14 = vld [vmem:[%s998_s2 + $0x50] sm:$0xff]  ;;  %s238_s17 = scalar_lea.vmem %s1001_s5, %s802_s14 }
  0x10   : > { %309 = vmatpush.bf16.msra.mxu0 %v810_v1  ;;  %v240_v18 = vld [vmem:[%s229_s6] sm:$0xf]  ;;  %v813_v20 = vld [vmem:[%s998_s2 + $0x48] sm:$0xff]  ;;  %v827_v29 = vld [vmem:[%s998_s2 + $0xb8] sm:$0xff] }
  0x11   : > { %v812_v21 = vld [vmem:[%s998_s2 + $0x40] sm:$0xff]  ;;  %v826_v30 = vld [vmem:[%s998_s2 + $0xb0] sm:$0xff]  ;;  %v825_v31 = vld [vmem:[%s998_s2 + $0xa8] sm:$0xff] }
  0x12   : > { %417 = vmatpush.bf16.msra.mxu2 %v818_v10  ;;  %v836_v22 = vld [vmem:[%s999_s3] ss:$0 sm:$0xff]  ;;  %v823_v33 = vld [vmem:[%s998_s2 + $0x98] sm:$0xff]  ;;  %v822_v34 = vld [vmem:[%s998_s2 + $0x90] sm:$0xff] }
  0x13   : > { %v824_v32 = vld [vmem:[%s998_s2 + $0xa0] sm:$0xff]  ;;  %v821_v39 = vld [vmem:[%s998_s2 + $0x88] sm:$0xff] }
  0x14   : > { %310 = vmatpush.bf16.msra.mxu0 %v809_v2  ;;  %v820_v40 = vld [vmem:[%s998_s2 + $0x80] sm:$0xff] }
  0x15   : > { %v837_v41 = vld [vmem:[%s999_s3 + $0x1] ss:$0 sm:$0xff]  ;;  %v838_v52 = vld [vmem:[%s999_s3 + $0x2] ss:$0 sm:$0xff]  ;;  %v803_v61 = vld [vmem:[%s1000_s4] sm:$0x30] }
  0x16   : > { %418 = vmatpush.bf16.msra.mxu2 %v817_v11  ;;  %v797_v60 = vld [vmem:[%s1000_s4] sm:$0xf] }
  0x17   : > { %v798_v0 = vor.u32 %v803_v61, %v797_v60 }
  0x18   : > { %311 = vmatpush.bf16.msra.mxu0 %v808_v3 }
  0x1a   : > { %419 = vmatpush.bf16.msra.mxu2 %v816_v12 }
  0x1c   : > { %312 = vmatpush.bf16.msra.mxu0 %v807_v4 }
  0x1e   : > { %420 = vmatpush.bf16.msra.mxu2 %v815_v13 }
  0x20   : > { %313 = vmatpush.bf16.msra.mxu0 %v806_v5 }
  0x22   : > { %421 = vmatpush.bf16.msra.mxu2 %v814_v14 }
  0x24   : > { %314 = vmatpush.bf16.msra.mxu0 %v805_v6 }
  0x26   : > { %422 = vmatpush.bf16.msra.mxu2 %v813_v20 }
  0x28   : > { %315 = vmatpush.bf16.msra.mxu0 %v804_v7 }
  0x2a   : > { %423 = vmatpush.bf16.msra.mxu2 %v812_v21 }
  0x2b   : > { %316 = vmatmul.bf16.vlgmr.msra.gmra.mxu0 %v243_v8 }
  0xa8   : > { %v317_v15 = vpop.f32.mrf.mxu0 }
  0xa9   : > { %v321_v16 = vpack.c.bf16 %v317_v15, %v317_v15 }
  0xab   : > { %v332_v17 = vsel %vm330_vm0, %v321_v16, 0 }
  0xac   : > { %341 = vmatpush.bf16.msra.mxu1 %v332_v17 }
  0xaf   : > { %694 = vmatmul.msk.bf16.vlgmr.msra.gmra.mxu1 %vm326_vm1, %v240_v18 }
  0xb0   : > { %v319_v19 = vpop.f32.mrf.mxu0  ;;  %520 = vmatpush.bf16.msrb.mxu1 %v827_v29 }
  0xb4   : > { %521 = vmatpush.bf16.msrb.mxu1 %v826_v30 }
  0xb8   : > { %522 = vmatpush.bf16.msrb.mxu1 %v825_v31 }
  0xbc   : > { %523 = vmatpush.bf16.msrb.mxu1 %v824_v32 }
  0xc0   : > { %524 = vmatpush.bf16.msrb.mxu1 %v823_v33 }
  0xc4   : > { %525 = vmatpush.bf16.msrb.mxu1 %v822_v34 }
  0xc8   : > { %526 = vmatpush.bf16.msrb.mxu1 %v821_v39 }
  0xcc   : > { %527 = vmatpush.bf16.msrb.mxu1 %v820_v40 }
 0x12c   : > { %v343_v23 = vpop.f32.mrf.mxu1 }
 0x12d   : > { %v344_v24 = vadd.f32 %v836_v22, %v343_v23 }
 0x12f   : > { %v347_v25 = vmul.f32 0.02, %v344_v24 }
 0x131   : > { %v348_v26 = vmax.f32 %v344_v24, %v347_v25 }
 0x133   : > { %v350_v27 = vpack.c.bf16 %v348_v26, %v348_v26 }
 0x134   : > { %v345_v28 = vpop.f32.mrf.mxu1 }
 0x135   : > { %424 = vmatmul.bf16.vlgmr.msra.gmra.mxu2 %v350_v27 }
 0x1b8   : > { %v425_v35 = vpop.f32.mrf.mxu2 }
 0x1b9   : > { %v429_v36 = vpack.c.bf16 %v425_v35, %v425_v35 }
 0x1bb   : > { %v436_v37 = vsel %vm330_vm0, %v429_v36, 0 }
 0x1bc   : > { %445 = vmatpush.bf16.msra.mxu3 %v436_v37 }
 0x1bf   : > { %744 = vmatmul.msk.bf16.vlgmr.msra.gmra.mxu3 %vm326_vm1, %v240_v18 }
 0x1c0   : > { %v427_v38 = vpop.f32.mrf.mxu2 }
 0x242   : > { %v447_v42 = vpop.f32.mrf.mxu3 }
 0x243   : > { %v448_v43 = vadd.f32 %v837_v41, %v447_v42 }
 0x245   : > { %v451_v44 = vmul.f32 0.02, %v448_v43 }
 0x247   : > { %v452_v45 = vmax.f32 %v448_v43, %v451_v44 }
 0x249   : > { %v454_v46 = vpack.c.bf16 %v452_v45, %v452_v45  ;;  %v453_v56 = vadd.f32 %v452_v45, %v348_v26 }
 0x24a   : > { %v449_v47 = vpop.f32.mrf.mxu3 }
 0x24b   : > { %528 = vmatmul.bf16.vlgmr.msrb.gmra.mxu1 %v454_v46 }
 0x2c8   : > { %v529_v48 = vpop.f32.mrf.mxu1 }
 0x2c9   : > { %v533_v49 = vpack.c.bf16 %v529_v48, %v529_v48 }
 0x2cb   : > { %v540_v50 = vsel %vm330_vm0, %v533_v49, 0 }
 0x2cc   : > { %549 = vmatpush.bf16.msrb.mxu3 %v540_v50 }
 0x2cf   : > { %794 = vmatmul.msk.bf16.vlgmr.msrb.gmra.mxu3 %vm326_vm1, %v240_v18 }
 0x2d0   : > { %v531_v51 = vpop.f32.mrf.mxu1 }
 0x352   : > { %v551_v53 = vpop.f32.mrf.mxu3 }
 0x353   : > { %v552_v54 = vadd.f32 %v838_v52, %v551_v53 }
 0x355   : > { %v555_v55 = vmul.f32 0.02, %v552_v54 }
 0x357   : > { %v556_v57 = vmax.f32 %v552_v54, %v555_v55 }
 0x359   : > { %v557_v58 = vadd.f32 %v556_v57, %v453_v56 }
 0x35a   : > { %v553_v59 = vpop.f32.mrf.mxu3 }
 0x35b   : > { %v558_v62 = vpack.c.bf16 %v557_v58, %v557_v58 }
 0x35d   : > { %v568_v63 = vsel %vm330_vm0, %v558_v62, 0 }
 0x35e   : > { %577 = vmatpush.bf16.msra.mxu3 %v568_v63 }
 0x361   : > { %799 = vmatmul.msk.bf16.vlgmr.msra.gmra.mxu3 %vm326_vm1, %v798_v0 }
 0x3e4   : > { %v579_v1 = vpop.f32.mrf.mxu3 }
 0x3e5   : > { %584 = vst [vmem:[%s238_s17] sm:$0xff] %v579_v1 }
 0x3ec   : > { %v581_v2 = vpop.f32.mrf.mxu3 }
 0x3ed   : > { %585 = vst [vmem:[%s238_s17 + $0x8] sm:$0xf] %v581_v2 }
 0x3ee PF: > { %s15_s18 = sadd.s32 1, %s845_s18  }
 0x3ef   : > { %p12_p4 = scmp.ge.s32.totalorder %s15_s18, 4  }
 0x3f1   :  { %14 = sbr.rel (!%p12_p4) target bundleno = 1 (0x1), region = 77 }

</bundles_post_ra>
